<compile_context>
chip_gen: v5e
topology: v5e:2x2
jax: 0.10.0
libtpu: 0.0.40
codegen_flags: <defaults>
</compile_context>

<pallas_src>
import jax
import jax.numpy as jnp
from jax import lax
from jax.experimental import pallas as pl
from jax.experimental.pallas import tpu as pltpu

_LANE = 128  # TB is the lane dim of the (2, TB) output block -> multiple of 128


def _nsp_head_kernel(x_ref, w_ref, b_ref, o_ref):
    # x_ref: [TB, H] (VMEM)   w_ref: [2, H] (VMEM, lane-dense)
    # b_ref: [2]     (SMEM)   o_ref: [2, TB] (VMEM, lane-dense)
    # Single MXU matmul, f32 accumulation, no full-tile cast of x.
    y = lax.dot_general(
        w_ref[...], x_ref[...],
        dimension_numbers=(((1,), (1,)), ((), ())),
        preferred_element_type=jnp.float32,
    )  # [2, TB]
    o_ref[0:1, :] = (y[0:1, :] + b_ref[0]).astype(o_ref.dtype)
    o_ref[1:2, :] = (y[1:2, :] + b_ref[1]).astype(o_ref.dtype)


def _vmem_capacity_bytes():
    try:
        return int(pltpu.get_tpu_info().vmem_capacity_bytes)
    except Exception:
        return 64 * 1024 * 1024  # conservative (v7x per-TC physical VMEM)


def _pick_batch_tile(batch, hidden, itemsize, x_budget):
    """Lane-aligned batch tile: big enough to amortize grid-step overhead,
    small enough to fit the double-buffered x budget, and (when batch allows)
    small enough that the grid has >= 4 steps for megacore + pipelining."""
    # Largest TB whose double-buffered x tile fits the budget.
    tb_mem = x_budget // (2 * hidden * itemsize)
    tb_mem = max(_LANE, (tb_mem // _LANE) * _LANE)
    if batch >= 4 * _LANE:
        # Keep >= ~4 grid steps so v7x's 2 TCs both get work and DMA/compute
        # double-buffering is engaged.
        tb_par = ((pl.cdiv(batch, 4) + _LANE - 1) // _LANE) * _LANE
        tb = min(tb_mem, tb_par)
    else:
        tb = tb_mem
    if tb >= batch:
        return batch  # single full block (== full array dims, always legal)
    return tb


def only_nsp_head(pooled_output, weight, bias, *, allow_jnp_fallback=True):
    """pooled_output: [B, H]; weight: [2, H] (PyTorch nn.Linear layout); bias: [2]."""
    B, H = pooled_output.shape
    assert weight.shape == (2, H)
    assert bias.shape == (2,)

    x_item = jnp.dtype(pooled_output.dtype).itemsize
    w_item = jnp.dtype(weight.dtype).itemsize

    # Tiny problem: pure launch/DMA-setup overhead -> let XLA handle/fuse it.
    if allow_jnp_fallback and B * H * x_item < (1 << 20):
        y = (jnp.dot(pooled_output.astype(jnp.float32), weight.T.astype(jnp.float32))
             + bias.astype(jnp.float32))
        return y.astype(pooled_output.dtype)

    phys_vmem = _vmem_capacity_bytes()
    # Double-buffered x budget: generation-aware (v7x has 64 MiB/TC), capped.
    x_budget = min(phys_vmem // 4, 20 * 1024 * 1024)
    tb = _pick_batch_tile(B, H, x_item, x_budget)
    grid = (pl.cdiv(B, tb),)

    # Actual footprint: 2x x-tile + 2x (2,tb)->(8,tb) out + 2x (2,H)->(8,H) weight.
    needed = (2 * tb * H * x_item
              + 2 * 8 * tb * x_item
              + 2 * 8 * H * w_item)
    vmem_limit = min(int(needed + (4 << 20)), (phys_vmem * 3) // 4)

    out_t = pl.pallas_call(
        _nsp_head_kernel,
        out_shape=jax.ShapeDtypeStruct((2, B), pooled_output.dtype),
        grid_spec=pltpu.PrefetchScalarGridSpec(
            num_scalar_prefetch=0,
            grid=grid,
            in_specs=[
                # batch-tiled activations -> double-buffered pipeline over B
                pl.BlockSpec((tb, H), lambda i: (i, 0)),
                # weight kept lane-dense [2, H]; constant block index -> fetched once
                pl.BlockSpec((2, H), lambda i: (0, 0)),
                # bias as two SMEM scalars (no lane-padded VMEM tile)
                pl.BlockSpec(memory_space=pltpu.MemorySpace.SMEM),
            ],
            # lane-dense [2, B] output; transposed (cheaply) in the wrapper
            out_specs=pl.BlockSpec((2, tb), lambda i: (0, i)),
        ),
        compiler_params=pltpu.CompilerParams(
            # independent batch tiles -> shard across both TCs on v7x megacore
            dimension_semantics=("parallel",),
            vmem_limit_bytes=vmem_limit,
        ),
    )(pooled_output, weight, bias)

    return out_t.T  # [B, 2]


if __name__ == "__main__":
    key = jax.random.PRNGKey(0)
    k_x, k_w, k_b, k_x2, k_x3 = jax.random.split(key, 5)

    # --- Small shape consistent with the module (batch=2, hidden=32). ---
    B, H = 2, 32
    pooled_output = jax.random.normal(k_x, (B, H), dtype=jnp.float32)
    weight = jax.random.normal(k_w, (2, H), dtype=jnp.float32) * 0.02  # nn.Linear(H, 2).weight
    bias = jax.random.normal(k_b, (2,), dtype=jnp.float32) * 0.02      # nn.Linear(H, 2).bias
    ref = pooled_output @ weight.T + bias

    # Force the Pallas kernel even at this tiny size (single full block).
    out = only_nsp_head(pooled_output, weight, bias, allow_jnp_fallback=False)
    jax.block_until_ready(out)
    assert out.shape == (B, 2)
    assert jnp.allclose(out, ref, atol=1e-5, rtol=1e-5)

    # Default path (tiny -> jnp fallback) must match too.
    out_fb = only_nsp_head(pooled_output, weight, bias)
    jax.block_until_ready(out_fb)
    assert jnp.allclose(out_fb, ref, atol=1e-5, rtol=1e-5)

    # --- Multi-tile f32 path (grid of 4, exercises the pipeline). ---
    B2, H2 = 4096, 64
    x2 = jax.random.normal(k_x2, (B2, H2), dtype=jnp.float32)
    w2 = jax.random.normal(k_w, (2, H2), dtype=jnp.float32) * 0.02
    b2 = jax.random.normal(k_b, (2,), dtype=jnp.float32) * 0.02
    out2 = only_nsp_head(x2, w2, b2)
    jax.block_until_ready(out2)
    ref2 = x2 @ w2.T + b2
    assert out2.shape == (B2, 2)
    assert jnp.allclose(out2, ref2, atol=1e-4, rtol=1e-4)

    # --- Multi-tile bf16 path (MXU-native, f32 accumulation). ---
    B3, H3 = 1024, 768
    x3 = jax.random.normal(k_x3, (B3, H3), dtype=jnp.float32).astype(jnp.bfloat16)
    w3 = (jax.random.normal(k_w, (2, H3), dtype=jnp.float32) * 0.02).astype(jnp.bfloat16)
    b3 = (jax.random.normal(k_b, (2,), dtype=jnp.float32) * 0.02).astype(jnp.bfloat16)
    out3 = only_nsp_head(x3, w3, b3)
    jax.block_until_ready(out3)
    ref3 = (x3.astype(jnp.float32) @ w3.astype(jnp.float32).T + b3.astype(jnp.float32))
    assert out3.shape == (B3, 2)
    assert jnp.allclose(out3.astype(jnp.float32), ref3, atol=2e-2, rtol=2e-2)

    print("KERNEL_OK")
</pallas_src>

<mosaic_0001>
module attributes {stable_mosaic.version = 11 : i64} {
  func.func @_nsp_head_kernel(%arg0: i32, %arg1: memref<2x32xf32, #tpu.memory_space<vmem>>, %arg2: memref<2x32xf32, #tpu.memory_space<vmem>>, %arg3: memref<2xf32, #tpu.memory_space<smem>>, %arg4: memref<2x2xf32, #tpu.memory_space<vmem>>) attributes {dimension_semantics = [#tpu.dimension_semantics<parallel>], iteration_bounds = array<i64: 1>, scalar_prefetch = 0 : i64, scratch_operands = 0 : i64, tpu.core_type = #tpu.core_type<tc>, window_params = [{transform_indices = @transform_0, window_bounds = array<i64: 2, 32>}, {pipeline_mode = #tpu.pipeline_mode<synchronous>, transform_indices = @transform_1, window_bounds = array<i64: 2, 32>}, {transform_indices = @transform_2, window_bounds = array<i64: 2>}, {transform_indices = @transform_3, window_bounds = array<i64: 2, 2>}]} {
    %c0 = arith.constant 0 : index
    %c0_0 = arith.constant 0 : index
    %0 = vector.load %arg2[%c0, %c0_0] : memref<2x32xf32, #tpu.memory_space<vmem>>, vector<2x32xf32>
    %c0_1 = arith.constant 0 : index
    %c0_2 = arith.constant 0 : index
    %1 = vector.load %arg1[%c0_1, %c0_2] : memref<2x32xf32, #tpu.memory_space<vmem>>, vector<2x32xf32>
    %cst = arith.constant dense<0.000000e+00> : vector<2x2xf32>
    %2 = tpu.matmul %0, %1, %cst {dimension_numbers = #tpu.dot_dimension_numbers<[1], [1], [0], [0], [0, 0, 1, 0], [], []>} : vector<2x32xf32>, vector<2x32xf32>, vector<2x2xf32> -> vector<2x2xf32>
    %3 = vector.extract_strided_slice %2 {offsets = [0, 0], sizes = [1, 2], strides = [1, 1]} : vector<2x2xf32> to vector<1x2xf32>
    %c0_3 = arith.constant 0 : index
    %4 = memref.load %arg3[%c0_3] : memref<2xf32, #tpu.memory_space<smem>>
    %5 = vector.broadcast %4 : f32 to vector<1x2xf32>
    %6 = arith.addf %3, %5 : vector<1x2xf32>
    %c0_4 = arith.constant 0 : index
    %c0_5 = arith.constant 0 : index
    %7 = vector.load %arg4[%c0_4, %c0_5] : memref<2x2xf32, #tpu.memory_space<vmem>>, vector<1x2xf32>
    tpu.vector_store %arg4[%c0_4, %c0_5], %6 {strides = array<i32>} : memref<2x2xf32, #tpu.memory_space<vmem>>, vector<1x2xf32>,
    %8 = vector.extract_strided_slice %2 {offsets = [1, 0], sizes = [1, 2], strides = [1, 1]} : vector<2x2xf32> to vector<1x2xf32>
    %c1 = arith.constant 1 : index
    %9 = memref.load %arg3[%c1] : memref<2xf32, #tpu.memory_space<smem>>
    %10 = vector.broadcast %9 : f32 to vector<1x2xf32>
    %11 = arith.addf %8, %10 : vector<1x2xf32>
    %c1_6 = arith.constant 1 : index
    %c0_7 = arith.constant 0 : index
    %12 = vector.load %arg4[%c1_6, %c0_7] : memref<2x2xf32, #tpu.memory_space<vmem>>, vector<1x2xf32>
    tpu.vector_store %arg4[%c1_6, %c0_7], %11 {strides = array<i32>} : memref<2x2xf32, #tpu.memory_space<vmem>>, vector<1x2xf32>,
    return
  }
  func.func @transform_0(%arg0: i32) -> (i32, i32) {
    %c0_i32 = arith.constant 0 : i32
    %c0_i32_0 = arith.constant 0 : i32
    return %arg0, %c0_i32 : i32, i32
  }
  func.func @transform_1(%arg0: i32) -> (i32, i32) {
    %c0_i32 = arith.constant 0 : i32
    %c0_i32_0 = arith.constant 0 : i32
    %c0_i32_1 = arith.constant 0 : i32
    return %c0_i32, %c0_i32_0 : i32, i32
  }
  func.func @transform_2(%arg0: i32) -> i32 {
    %c0_i32 = arith.constant 0 : i32
    %c0_i32_0 = arith.constant 0 : i32
    return %c0_i32 : i32
  }
  func.func @transform_3(%arg0: i32) -> (i32, i32) {
    %c0_i32 = arith.constant 0 : i32
    %c0_i32_0 = arith.constant 0 : i32
    return %c0_i32, %arg0 : i32, i32
  }
}

</mosaic_0001>

<bundles_post_ra>
// kernel: tpu_custom_call.1
= control target key start
LH: loop header
LB: loop body
LE: loop exit
PB: predicated region body
PF: predicated region fallthrough
CT: control target
= control target key end

     0   :  { %8 = vsyncpa [#allocation3], 0  ;;  %s249_s0 = inlined_call_operand.hbm [shape: f32[2,32], index: 0, kind: input, shape index: {}]   ;;  %s250_s1 = inlined_call_operand.hbm [shape: f32[2,32], index: 1, kind: input, shape index: {}]   ;;  %s251_s2 = inlined_call_operand.vmem [shape: f32[2], index: 2, kind: input, shape index: {}]   ;;  %s252_s3 = inlined_call_operand.hbm [shape: f32[2,2], index: 3, kind: output, shape index: {}]  }
   0x1   :  { %9 = vsyncpa [#allocation7], 0 }
   0x2   :  { %10 = vsyncpa [#allocation5], 0 }
   0x3   :  { %11 = vsyncpa [#allocation4], 0  ;;  %s17_s14 = sshll.u32 %s249_s0, 4  ;;  %s213_s15 = smov [#allocation2]   ;;  %s18_s14 = int_to_ptr.hbm [resolvable:$true] %s17_s14 }
   0x4   :  { %s19_s16 = sshll.u32 %s213_s15, 4  ;;  %s28_s19 = sshll.u32 %s250_s1, 4  ;;  %s20_s16 = int_to_ptr.vmem [resolvable:$true] %s19_s16  ;;  %s29_s19 = int_to_ptr.hbm [resolvable:$true] %s28_s19 }
   0x5   :  { %22 = dma.hbm_to_vmem [thread:$0]  %s18_s14, 32, %s20_s16, [#allocation3]  }
   0x6   :  { %s214_s20 = smov [#allocation6]   ;;  %s39_s24 = sshll.u32 %s251_s2, 4  ;;  %s40_s24 = int_to_ptr.vmem [resolvable:$true] %s39_s24 }
   0x7   :  { %s30_s21 = sshll.u32 %s214_s20, 4  ;;  %s215_s0 = smov [#allocation8]   ;;  %s31_s21 = int_to_ptr.vmem [resolvable:$true] %s30_s21 }
   0x8   :  { %33 = dma.hbm_to_vmem [thread:$0]  %s29_s19, 32, %s31_s21, [#allocation7]  }
   0x9   :  { %42 = dma.vmem_to_smem %s40_s24, 16, %s215_s0, [#allocation5]  }
   0xa   :  { %205 = dma.done.wait [#allocation3], 32  }
   0xb   :  { %206 = vsyncadd [#allocation3], 4294967264 }
   0xc   :  { %207 = dma.done.wait [#allocation7], 32  }
   0xd   :  { %208 = vsyncadd [#allocation7], 4294967264 }
   0xe   :  { %209 = dma.done.wait [#allocation5], 16  }
   0xf   :  { %210 = vsyncadd [#allocation5], 4294967280 }
  0x10   :  { %55 = sfence }
  0x11   :  { %v57_v0 = vld [vmem:[#allocation2] sm:$0x3]  ;;  %vm58_vm0 = vcmask 261120   ;;  %v56_v1 = vld [vmem:[#allocation6] sm:$0x3]  ;;  %s85_s1 = sld [smem:[#allocation8]] }
  0x12   :  { %114 = vmatpush.xpose.msk.msra.mxu0 %vm58_vm0, %v57_v0  ;;  %s116_s25 = sld [smem:[#allocation8 + $0x1]]  ;;  %s216_s2 = smov [#allocation9]   ;;  %vm88_vm1 = vcmask 8192   ;;  %vm93_vm2 = vcmask 9217  }
  0x13   :  { %s100_s26 = sshll.u32 %s216_s2, 4  ;;  %s102_s29 = sshll.u32 %s252_s3, 4  ;;  %s101_s26 = int_to_ptr.vmem [resolvable:$true] %s100_s26  ;;  %s103_s29 = int_to_ptr.hbm [resolvable:$true] %s102_s29 }
  0x15   :  { %115 = vmatmul.msk.f32.vlgmr.msra.gmra.mxu0 %vm58_vm0, %v56_v1 }
  0x17   :  { %v86_v2 = vstv %s85_s1 }
  0x18   :  { %v91_v3 = vstv %s116_s25 }
  0x92   :  { %v82_v4 = vpop.f32.mrf.mxu0 }
  0x93   :  { %v87_v5 = vadd.f32 %v86_v2, %v82_v4  ;;  %v92_v6 = vadd.f32 %v91_v3, %v82_v4 }
  0x95   :  { %89 = vst.msk [vmem:[#allocation9] sm:$0x1] %vm88_vm1, %v87_v5 }
  0x96   :  { %94 = vst.msk [vmem:[#allocation9] sm:$0x2] %vm93_vm2, %v92_v6 }
  0x97   :  { %105 = dma.vmem_to_hbm [thread:$0]  %s101_s26, 32, %s103_s29, [#allocation4]  }
  0x98   :  { %211 = dma.done.wait [#allocation4], 32  }
  0x99   :  { %212 = vsyncadd [#allocation4], 4294967264 }
  0x9a   :  { %110 = vsyncpa [#allocation3], 1 }
  0x9b   :  { %111 = vsyncpa [#allocation7], 1 }
  0x9c   :  { %112 = vsyncpa [#allocation4], 1 }
  0x9d   :  { %113 = vsyncpa [#allocation5], 1 }

</bundles_post_ra>
